<compile_context>
chip_gen: v6e
topology: v6e:2x2x1
jax: 0.10.0
libtpu: 0.0.40
codegen_flags: <defaults>
</compile_context>

<pallas_src>
import functools

import jax
import jax.numpy as jnp
from jax.experimental import pallas as pl
from jax.experimental.pallas import tpu as pltpu  # noqa: F401  (kept for TPU-specific tuning hooks)

# ---------------- small synthetic hyper-params ----------------
B = 2                               # batch
C_IMG = 3                           # image channels
IMG = 16                            # image H = W
PATCH = 2                           # patch size -> 8x8 grid (stand-in for 32x32)
HG = WG = IMG // PATCH              # 8
N_TOK = HG * WG                     # 64 tokens per image
C_PATCH = C_IMG * PATCH * PATCH     # 12
K_PAD = 128                         # lane-dense padded patch dim (12 -> 128, zero pad)
C_ENC = 32                          # encoder hidden (stand-in for 768)
C_ADJ = 64                          # channel_adjust out (stand-in for 2048)
C_DEC = 16                          # decoder out channels (stand-in)
N_CLS = 1                           # binary segmentation head -> 1 channel
UPSCALE = 14                        # same scale factor as the PyTorch module
OUT_HW = HG * UPSCALE               # 112
OUT_PAD = 128                       # lane-dense padded output width (112 -> 128)


# ---------------- fused Pallas kernel (single step, no grid) ----------------
def _fused_kernel(patches_ref,       # VMEM (B*64, 128)  zero-padded patch vectors (all images)
                  w_ea_ref,          # VMEM (128, 64)    zero-padded enc_w @ adj_w (folded)
                  dec_w_ref,         # VMEM (64, 16)
                  const_ref,         # VMEM (8, 128)     packed row constants
                  wx_rep_ref,        # VMEM (64, 128)    tile(WxT_pad, (8, 1))
                  wyg_ref,           # VMEM (112, 64)    Wy @ Gy
                  o_ref):            # VMEM (B, 112, 128)
    c = const_ref[...]                                                   # (8, 128)

    x = patches_ref[...]                                                 # (B*64, 128)

    # patch-embed (encoder stub) + channel_adjust folded into one matmul;
    # the zero-padded K rows/lanes contribute exactly 0.
    h = jnp.dot(x, w_ea_ref[...], preferred_element_type=jnp.float32)
    h = h + c[0:1, :C_ADJ]                                               # (B*64, 64)

    # decoder stand-in: pointwise conv + ReLU.
    h = jnp.dot(h, dec_w_ref[...], preferred_element_type=jnp.float32)
    h = jnp.maximum(h + c[1:2, :C_DEC], 0.0)                             # (B*64, 16)

    # segmentation head (C_DEC -> 1): VPU multiply + XLU lane-sum, stays in
    # VMEM, never stored as a lane-1 tensor.  head_b is applied post-upsample.
    s = jnp.sum(h * c[2:3, :C_DEC], axis=-1, keepdims=True)              # (B*64, 1)

    # fused reshape(8, 8) + align_corners=True bilinear x14 upsample, per image:
    #   Wy @ P @ WxT  ==  (Wy @ Gy) @ (s_b * tile(WxT_pad, (8, 1)))
    # head_b is added as a lane-dense row (zero in padded lanes) after the
    # matmul -- exact because bilinear interpolation of a constant is constant.
    wyg = wyg_ref[...]                                                   # (112, 64)
    wx_rep = wx_rep_ref[...]                                             # (64, 128)
    hb_row = c[3:4, :]                                                   # (1, 128)
    n_img = o_ref.shape[0]                                               # static
    for bi in range(n_img):                                              # B=2, unrolled
        sb = s[bi * N_TOK:(bi + 1) * N_TOK, :]                           # (64, 1)
        sm = sb * wx_rep                                                 # (64, 128)
        out = jnp.dot(wyg, sm, preferred_element_type=jnp.float32)       # (112, 128)
        o_ref[bi] = (out + hb_row).astype(o_ref.dtype)


# ---------------- host-side helpers ----------------
def _bilinear_matrix(in_size, out_size):
    """align_corners=True bilinear interpolation matrix (out_size, in_size)."""
    o = jnp.arange(out_size, dtype=jnp.float32)
    src = o * (in_size - 1) / (out_size - 1)
    i0 = jnp.clip(jnp.floor(src).astype(jnp.int32), 0, in_size - 1)
    i1 = jnp.minimum(i0 + 1, in_size - 1)
    frac = src - i0.astype(jnp.float32)
    w = jnp.zeros((out_size, in_size), dtype=jnp.float32)
    rows = jnp.arange(out_size)
    w = w.at[rows, i0].add(1.0 - frac)
    w = w.at[rows, i1].add(frac)
    return w


def _extract_patches(x_img):
    b, c_img, h, w = x_img.shape
    hg, wg = h // PATCH, w // PATCH
    p = x_img.reshape(b, c_img, hg, PATCH, wg, PATCH)
    return p.transpose(0, 2, 4, 1, 3, 5).reshape(b, hg * wg, c_img * PATCH * PATCH)


# ---------------- model ----------------
def init_params(key):
    ks = jax.random.split(key, 8)
    s = 0.1
    return {
        # encoder stub (patch embedding) params
        "enc_w": s * jax.random.normal(ks[0], (C_PATCH, C_ENC), jnp.float32),
        "enc_b": s * jax.random.normal(ks[1], (C_ENC,), jnp.float32),
        # channel_adjust = nn.Conv2d(768, 2048, kernel_size=1)  (scaled down)
        "adj_w": s * jax.random.normal(ks[2], (C_ENC, C_ADJ), jnp.float32),
        "adj_b": s * jax.random.normal(ks[3], (C_ADJ,), jnp.float32),
        # decoder stand-in
        "dec_w": s * jax.random.normal(ks[4], (C_ADJ, C_DEC), jnp.float32),
        "dec_b": s * jax.random.normal(ks[5], (C_DEC,), jnp.float32),
        # segmentation_head stand-in
        "head_w": s * jax.random.normal(ks[6], (C_DEC, N_CLS), jnp.float32),
        "head_b": s * jax.random.normal(ks[7], (N_CLS,), jnp.float32),
    }


def dino_binary_seg_forward(params, x_img):
    b = x_img.shape[0]
    hp = jax.lax.Precision.HIGHEST

    # --- encoder(x) ---
    # TODO(synk): real encoder is an external DINO ViT; the stand-in is a linear
    # patch embedding. (The CLS token the real encoder prepends is dropped by
    # last_hidden_state[:, 1:, :], so it never reaches the data path and is
    # omitted entirely here.)
    patches = _extract_patches(x_img).reshape(b * N_TOK, C_PATCH)        # (B*64, 12)
    # lane-dense zero pad of the K dim (mathematical no-op)
    patches_pad = jnp.pad(patches, ((0, 0), (0, K_PAD - C_PATCH)))       # (B*64, 128)

    # fold patch-embed @ channel_adjust (both linear, no activation between)
    w_ea = jnp.dot(params["enc_w"], params["adj_w"], precision=hp)       # (12, 64)
    w_ea_pad = jnp.pad(w_ea, ((0, K_PAD - C_PATCH), (0, 0)))             # (128, 64)
    b_ea = (jnp.dot(params["enc_b"], params["adj_w"], precision=hp)
            + params["adj_b"])                                           # (64,)

    # upsample constants (align_corners=True bilinear), precomputed host-side
    wy = _bilinear_matrix(HG, OUT_HW)                                    # (112, 8)
    wx = _bilinear_matrix(WG, OUT_HW)                                    # (112, 8)
    wxT_pad = jnp.pad(wx.T, ((0, 0), (0, OUT_PAD - OUT_HW)))             # (8, 128)
    wx_rep = jnp.tile(wxT_pad, (HG, 1))                                  # (64, 128)
    gy = jnp.repeat(jnp.eye(HG, dtype=jnp.float32), WG, axis=1)          # (8, 64)
    wyg = jnp.dot(wy, gy, precision=hp)                                  # (112, 64)

    # pack all tiny row constants into one (8, 128) slab -> a single transfer
    #   row 0: b_ea (64 valid lanes)     row 1: dec_b (16 valid lanes)
    #   row 2: head_w (16 valid lanes)   row 3: head_b in lanes 0..111, 0 after
    const_slab = jnp.zeros((8, OUT_PAD), jnp.float32)
    const_slab = const_slab.at[0, :C_ADJ].set(b_ea)
    const_slab = const_slab.at[1, :C_DEC].set(params["dec_b"])
    const_slab = const_slab.at[2, :C_DEC].set(params["head_w"].reshape(-1))
    const_slab = const_slab.at[3, :OUT_HW].set(params["head_b"][0])

    # TODO(synk): decoder / segmentation_head are external modules in the real
    # model; their stand-ins (pointwise conv + ReLU, 16->1 projection) are fused
    # into this single kernel.
    # Single kernel invocation, no grid: every operand is a full-array VMEM
    # block (~0.3 MB total), batch folded into M, so there is exactly one
    # pipeline setup and one set of DMAs.
    out_pad = pl.pallas_call(
        _fused_kernel,
        out_shape=jax.ShapeDtypeStruct((b, OUT_HW, OUT_PAD), jnp.float32),
    )(patches_pad, w_ea_pad, params["dec_w"], const_slab, wx_rep, wyg)

    # drop the lane padding (128 -> 112) and return NCHW like the PyTorch module
    return out_pad[:, None, :, :OUT_HW]


# ---------------- pure-jnp reference (unfused, mirrors the PyTorch module) ----
def reference_forward(params, x_img):
    b = x_img.shape[0]
    hp = jax.lax.Precision.HIGHEST
    patches = _extract_patches(x_img).reshape(b * N_TOK, C_PATCH)
    tok = jnp.dot(patches, params["enc_w"], precision=hp) + params["enc_b"]
    # last_hidden_state[:, 1:, :].transpose(1,2).reshape(B, C, Hg, Wg):
    # 1x1 convs are pointwise in channels, so keep the flat (B*N, C) layout.
    x = jnp.dot(tok, params["adj_w"], precision=hp) + params["adj_b"]     # channel_adjust
    x = jnp.maximum(jnp.dot(x, params["dec_w"], precision=hp) + params["dec_b"], 0.0)
    x = jnp.dot(x, params["head_w"], precision=hp) + params["head_b"]     # (B*N, 1)
    p = x.reshape(b, HG, WG)
    wy = _bilinear_matrix(HG, OUT_HW)
    wx = _bilinear_matrix(WG, OUT_HW)
    out = jnp.einsum("Hh,bhw,Ww->bHW", wy, p, wx, precision=hp)
    return out[:, None]


if __name__ == "__main__":
    key = jax.random.PRNGKey(0)
    kp, kx = jax.random.split(key)
    params = init_params(kp)
    x = jax.random.normal(kx, (B, C_IMG, IMG, IMG), dtype=jnp.float32)

    fwd = jax.jit(functools.partial(dino_binary_seg_forward, params))
    out = jax.block_until_ready(fwd(x))

    assert out.shape == (B, N_CLS, OUT_HW, OUT_HW), out.shape
    assert out.dtype == jnp.float32
    assert bool(jnp.all(jnp.isfinite(out)))

    ref = reference_forward(params, x)
    max_err = float(jnp.max(jnp.abs(out - ref)))
    assert bool(jnp.allclose(out, ref, atol=1e-2)), max_err
    print("KERNEL_OK")
</pallas_src>

<mosaic_0001>
module attributes {stable_mosaic.version = 11 : i64} {
  func.func private @main(%arg0: i32) attributes {dimension_semantics = [#tpu.dimension_semantics<core_parallel>], iteration_bounds = array<i64: 2>, tpu.core_type = #tpu.core_type<sc_scalar_subcore>, window_params = []} {
    return
  }
}

module attributes {stable_mosaic.version = 11 : i64} {
  func.func private @main(%arg0: i32) attributes {dimension_semantics = [#tpu.dimension_semantics<core_parallel>], iteration_bounds = array<i64: 2>, tpu.core_type = #tpu.core_type<sc_scalar_subcore>, window_params = []} {
    return
  }
}

module attributes {stable_mosaic.version = 11 : i64} {
  func.func @_fused_kernel(%arg0: memref<128x128xf32, #tpu.memory_space<vmem>>, %arg1: memref<128x64xf32, #tpu.memory_space<vmem>>, %arg2: memref<64x16xf32, #tpu.memory_space<vmem>>, %arg3: memref<8x128xf32, #tpu.memory_space<vmem>>, %arg4: memref<64x128xf32, #tpu.memory_space<vmem>>, %arg5: memref<112x64xf32, #tpu.memory_space<vmem>>, %arg6: memref<2x112x128xf32, #tpu.memory_space<vmem>>) attributes {dimension_semantics = [], scalar_prefetch = 0 : i64, scratch_operands = 0 : i64, tpu.core_type = #tpu.core_type<tc>} {
    %c0 = arith.constant 0 : index
    %c0_0 = arith.constant 0 : index
    %0 = vector.load %arg3[%c0, %c0_0] : memref<8x128xf32, #tpu.memory_space<vmem>>, vector<8x128xf32>
    %c0_1 = arith.constant 0 : index
    %c0_2 = arith.constant 0 : index
    %1 = vector.load %arg0[%c0_1, %c0_2] : memref<128x128xf32, #tpu.memory_space<vmem>>, vector<128x128xf32>
    %c0_3 = arith.constant 0 : index
    %c0_4 = arith.constant 0 : index
    %2 = vector.load %arg1[%c0_3, %c0_4] : memref<128x64xf32, #tpu.memory_space<vmem>>, vector<128x64xf32>
    %cst = arith.constant dense<0.000000e+00> : vector<128x64xf32>
    %3 = tpu.matmul %1, %2, %cst {dimension_numbers = #tpu.dot_dimension_numbers<[1], [0], [0], [1], [0, 0, 1, 1], [], []>} : vector<128x128xf32>, vector<128x64xf32>, vector<128x64xf32> -> vector<128x64xf32>
    %4 = vector.extract_strided_slice %0 {offsets = [0, 0], sizes = [1, 64], strides = [1, 1]} : vector<8x128xf32> to vector<1x64xf32>
    %5 = vector.broadcast %4 : vector<1x64xf32> to vector<128x64xf32>
    %6 = arith.addf %3, %5 : vector<128x64xf32>
    %c0_5 = arith.constant 0 : index
    %c0_6 = arith.constant 0 : index
    %7 = vector.load %arg2[%c0_5, %c0_6] : memref<64x16xf32, #tpu.memory_space<vmem>>, vector<64x16xf32>
    %cst_7 = arith.constant dense<0.000000e+00> : vector<128x16xf32>
    %8 = tpu.matmul %6, %7, %cst_7 {dimension_numbers = #tpu.dot_dimension_numbers<[1], [0], [0], [1], [0, 0, 1, 1], [], []>} : vector<128x64xf32>, vector<64x16xf32>, vector<128x16xf32> -> vector<128x16xf32>
    %9 = vector.extract_strided_slice %0 {offsets = [1, 0], sizes = [1, 16], strides = [1, 1]} : vector<8x128xf32> to vector<1x16xf32>
    %10 = vector.broadcast %9 : vector<1x16xf32> to vector<128x16xf32>
    %11 = arith.addf %8, %10 : vector<128x16xf32>
    %cst_8 = arith.constant 0.000000e+00 : f32
    %12 = vector.broadcast %cst_8 : f32 to vector<128x16xf32>
    %13 = arith.maximumf %11, %12 : vector<128x16xf32>
    %14 = vector.extract_strided_slice %0 {offsets = [2, 0], sizes = [1, 16], strides = [1, 1]} : vector<8x128xf32> to vector<1x16xf32>
    %15 = vector.broadcast %14 : vector<1x16xf32> to vector<128x16xf32>
    %16 = arith.mulf %13, %15 : vector<128x16xf32>
    %cst_9 = arith.constant dense<0.000000e+00> : vector<128xf32>
    %17 = vector.multi_reduction <add>, %16, %cst_9 [1] : vector<128x16xf32> to vector<128xf32>
    %18 = vector.shape_cast %17 : vector<128xf32> to vector<128x1xf32>
    %c0_10 = arith.constant 0 : index
    %c0_11 = arith.constant 0 : index
    %19 = vector.load %arg5[%c0_10, %c0_11] : memref<112x64xf32, #tpu.memory_space<vmem>>, vector<112x64xf32>
    %c0_12 = arith.constant 0 : index
    %c0_13 = arith.constant 0 : index
    %20 = vector.load %arg4[%c0_12, %c0_13] : memref<64x128xf32, #tpu.memory_space<vmem>>, vector<64x128xf32>
    %21 = vector.extract_strided_slice %0 {offsets = [3, 0], sizes = [1, 128], strides = [1, 1]} : vector<8x128xf32> to vector<1x128xf32>
    %22 = vector.extract_strided_slice %18 {offsets = [0, 0], sizes = [64, 1], strides = [1, 1]} : vector<128x1xf32> to vector<64x1xf32>
    %23 = vector.broadcast %22 : vector<64x1xf32> to vector<64x128xf32>
    %24 = arith.mulf %23, %20 : vector<64x128xf32>
    %cst_14 = arith.constant dense<0.000000e+00> : vector<112x128xf32>
    %25 = tpu.matmul %19, %24, %cst_14 {dimension_numbers = #tpu.dot_dimension_numbers<[1], [0], [0], [1], [0, 0, 1, 1], [], []>} : vector<112x64xf32>, vector<64x128xf32>, vector<112x128xf32> -> vector<112x128xf32>
    %26 = vector.broadcast %21 : vector<1x128xf32> to vector<112x128xf32>
    %27 = arith.addf %25, %26 : vector<112x128xf32>
    %c0_15 = arith.constant 0 : index
    %c0_16 = arith.constant 0 : index
    %c0_17 = arith.constant 0 : index
    %28 = vector.load %arg6[%c0_15, %c0_16, %c0_17] : memref<2x112x128xf32, #tpu.memory_space<vmem>>, vector<1x112x128xf32>
    %29 = vector.shape_cast %28 : vector<1x112x128xf32> to vector<112x128xf32>
    %30 = vector.shape_cast %27 : vector<112x128xf32> to vector<1x112x128xf32>
    tpu.vector_store %arg6[%c0_15, %c0_16, %c0_17], %30 {strides = array<i32>} : memref<2x112x128xf32, #tpu.memory_space<vmem>>, vector<1x112x128xf32>,
    %31 = vector.extract_strided_slice %18 {offsets = [64, 0], sizes = [64, 1], strides = [1, 1]} : vector<128x1xf32> to vector<64x1xf32>
    %32 = vector.broadcast %31 : vector<64x1xf32> to vector<64x128xf32>
    %33 = arith.mulf %32, %20 : vector<64x128xf32>
    %cst_18 = arith.constant dense<0.000000e+00> : vector<112x128xf32>
    %34 = tpu.matmul %19, %33, %cst_18 {dimension_numbers = #tpu.dot_dimension_numbers<[1], [0], [0], [1], [0, 0, 1, 1], [], []>} : vector<112x64xf32>, vector<64x128xf32>, vector<112x128xf32> -> vector<112x128xf32>
    %35 = vector.broadcast %21 : vector<1x128xf32> to vector<112x128xf32>
    %36 = arith.addf %34, %35 : vector<112x128xf32>
    %c1 = arith.constant 1 : index
    %c0_19 = arith.constant 0 : index
    %c0_20 = arith.constant 0 : index
    %37 = vector.load %arg6[%c1, %c0_19, %c0_20] : memref<2x112x128xf32, #tpu.memory_space<vmem>>, vector<1x112x128xf32>
    %38 = vector.shape_cast %37 : vector<1x112x128xf32> to vector<112x128xf32>
    %39 = vector.shape_cast %36 : vector<112x128xf32> to vector<1x112x128xf32>
    tpu.vector_store %arg6[%c1, %c0_19, %c0_20], %39 {strides = array<i32>} : memref<2x112x128xf32, #tpu.memory_space<vmem>>, vector<1x112x128xf32>,
    return
  }
}

</mosaic_0001>

<bundles_post_ra>
// kernel: dino_binary_seg_forward.1
= control target key start
LH: loop header
LB: loop body
LE: loop exit
PB: predicated region body
PF: predicated region fallthrough
CT: control target
= control target key end

     0   :  { %v56_v40 = vlaneseq  ;;  %vm217_vm0 = vcmask 523264   ;;  %vm447_vm1 = vcmask 130048   ;;  %s1673_s1 = inlined_call_operand.vmem [shape: f32[128,64], index: 1, kind: input, shape index: {}]   ;;  %s1674_s0 = inlined_call_operand.vmem [shape: f32[128,128], index: 0, kind: input, shape index: {}]   ;;  %s1675_s2 = inlined_call_operand.vmem [shape: f32[64,16], index: 2, kind: input, shape index: {}]   ;;  %s1676_s3 = inlined_call_operand.vmem [shape: f32[8,128], index: 3, kind: input, shape index: {}]   ;;  %s1677_s5 = inlined_call_operand.vmem [shape: f32[112,64], index: 5, kind: input, shape index: {}]   ;;  %s1678_s4 = inlined_call_operand.vmem [shape: f32[64,128], index: 4, kind: input, shape index: {}]   ;;  %s1679_s6 = inlined_call_operand.vmem [shape: f32[2,112,128], index: 6, kind: output, shape index: {}]  }
   0x1   :  { %v55_v0 = vld [vmem:[%s1673_s1 + $0x78] sm:$0xff]  ;;  %v54_v1 = vld [vmem:[%s1673_s1 + $0x70] sm:$0xff]  ;;  %v53_v2 = vld [vmem:[%s1673_s1 + $0x68] sm:$0xff] }
   0x2   :  { %1041 = vmatprep.subr.mxu0 %v55_v0  ;;  %v52_v3 = vld [vmem:[%s1673_s1 + $0x60] sm:$0xff]  ;;  %v51_v5 = vld [vmem:[%s1673_s1 + $0x58] sm:$0xff]  ;;  %v50_v6 = vld [vmem:[%s1673_s1 + $0x50] sm:$0xff]  ;;  %v1382_v41 = vshrl.u32 %v56_v40, 7 }
   0x3   :  { %1042 = vmatpush3.msra.mxu0 %v55_v0  ;;  %v24_v4 = vld [vmem:[%s1674_s0] sm:$0xff]  ;;  %v49_v7 = vld [vmem:[%s1673_s1 + $0x48] sm:$0xff]  ;;  %v212_v8 = vld [vmem:[%s1675_s2 + $0x38] sm:$0xff] }
   0x4   :  { %1043 = vmatprep.subr.mxu0 %v54_v1  ;;  %1073 = vmatprep.mubr.f32.mxu0 %v24_v4  ;;  %v211_v9 = vld [vmem:[%s1675_s2 + $0x30] sm:$0xff]  ;;  %v48_v10 = vld [vmem:[%s1673_s1 + $0x40] sm:$0xff]  ;;  %v210_v11 = vld [vmem:[%s1675_s2 + $0x28] sm:$0xff]  ;;  %v58_v42 = vsub.s32 0, %v1382_v41 }
   0x5   :  { %1044 = vmatpush3.msra.mxu0 %v54_v1  ;;  %1097 = vmatprep.subr.mxu1 %v212_v8  ;;  %v47_v12 = vld [vmem:[%s1673_s1 + $0x38] sm:$0xff]  ;;  %v209_v13 = vld [vmem:[%s1675_s2 + $0x20] sm:$0xff]  ;;  %v46_v14 = vld [vmem:[%s1673_s1 + $0x30] sm:$0xff] }
   0x6   :  { %1045 = vmatprep.subr.mxu0 %v53_v2  ;;  %1098 = vmatpush3.msra.mxu1 %v212_v8  ;;  %v208_v15 = vld [vmem:[%s1675_s2 + $0x18] sm:$0xff]  ;;  %v45_v16 = vld [vmem:[%s1673_s1 + $0x28] sm:$0xff]  ;;  %v44_v17 = vld [vmem:[%s1673_s1 + $0x20] sm:$0xff] }
   0x7   :  { %1046 = vmatpush3.msra.mxu0 %v53_v2  ;;  %1099 = vmatprep.subr.mxu1 %v211_v9  ;;  %v43_v18 = vld [vmem:[%s1673_s1 + $0x18] sm:$0xff]  ;;  %v42_v19 = vld [vmem:[%s1673_s1 + $0x10] sm:$0xff]  ;;  %v41_v20 = vld [vmem:[%s1673_s1 + $0x8] sm:$0xff] }
   0x8   :  { %1047 = vmatprep.subr.mxu0 %v52_v3  ;;  %1100 = vmatpush3.msra.mxu1 %v211_v9  ;;  %v40_v21 = vld [vmem:[%s1673_s1] sm:$0xff]  ;;  %v25_v22 = vld [vmem:[%s1674_s0 + $0x8] sm:$0xff]  ;;  %v26_v23 = vld [vmem:[%s1674_s0 + $0x10] sm:$0xff] }
   0x9   :  { %1048 = vmatpush3.msra.mxu0 %v52_v3  ;;  %1101 = vmatprep.subr.mxu1 %v210_v11  ;;  %v27_v24 = vld [vmem:[%s1674_s0 + $0x18] sm:$0xff]  ;;  %v28_v25 = vld [vmem:[%s1674_s0 + $0x20] sm:$0xff]  ;;  %v29_v26 = vld [vmem:[%s1674_s0 + $0x28] sm:$0xff] }
   0xa   :  { %1049 = vmatprep.subr.mxu0 %v51_v5  ;;  %1102 = vmatpush3.msra.mxu1 %v210_v11  ;;  %v30_v27 = vld [vmem:[%s1674_s0 + $0x30] sm:$0xff]  ;;  %v31_v28 = vld [vmem:[%s1674_s0 + $0x38] sm:$0xff]  ;;  %v32_v29 = vld [vmem:[%s1674_s0 + $0x40] sm:$0xff] }
   0xb   :  { %1050 = vmatpush3.msra.mxu0 %v51_v5  ;;  %1103 = vmatprep.subr.mxu1 %v209_v13  ;;  %v33_v30 = vld [vmem:[%s1674_s0 + $0x48] sm:$0xff]  ;;  %v34_v31 = vld [vmem:[%s1674_s0 + $0x50] sm:$0xff]  ;;  %v35_v32 = vld [vmem:[%s1674_s0 + $0x58] sm:$0xff] }
   0xc   :  { %1051 = vmatprep.subr.mxu0 %v50_v6  ;;  %1104 = vmatpush3.msra.mxu1 %v209_v13  ;;  %v36_v33 = vld [vmem:[%s1674_s0 + $0x60] sm:$0xff]  ;;  %v37_v34 = vld [vmem:[%s1674_s0 + $0x68] sm:$0xff]  ;;  %v38_v35 = vld [vmem:[%s1674_s0 + $0x70] sm:$0xff] }
   0xd   :  { %1052 = vmatpush3.msra.mxu0 %v50_v6  ;;  %1105 = vmatprep.subr.mxu1 %v208_v15  ;;  %v39_v36 = vld [vmem:[%s1674_s0 + $0x78] sm:$0xff]  ;;  %v207_v37 = vld [vmem:[%s1675_s2 + $0x10] sm:$0xff]  ;;  %v206_v38 = vld [vmem:[%s1675_s2 + $0x8] sm:$0xff] }
   0xe   :  { %1053 = vmatprep.subr.mxu0 %v49_v7  ;;  %1106 = vmatpush3.msra.mxu1 %v208_v15  ;;  %v205_v39 = vld [vmem:[%s1675_s2] sm:$0xff]  ;;  %v215_v15 = vsub.s32 1, %v1382_v41 }
   0xf   :  { %1054 = vmatpush3.msra.mxu0 %v49_v7  ;;  %1107 = vmatprep.subr.mxu1 %v207_v37  ;;  %v1388_v43 = vld [vmem:[%s1676_s3] sm:$0xff] }
  0x10   :  { %1055 = vmatprep.subr.mxu0 %v48_v10  ;;  %1108 = vmatpush3.msra.mxu1 %v207_v37  ;;  %v59_v44 = vrot.slane %v1388_v43, %v58_v42 }
  0x11   :  { %1056 = vmatpush3.msra.mxu0 %v48_v10  ;;  %1109 = vmatprep.subr.mxu1 %v206_v38 }
  0x12   :  { %1057 = vmatprep.subr.mxu0 %v47_v12  ;;  %1110 = vmatpush3.msra.mxu1 %v206_v38 }
  0x13   :  { %1058 = vmatpush3.msra.mxu0 %v47_v12  ;;  %1111 = vmatprep.subr.mxu1 %v205_v39 }
  0x14   :  { %1059 = vmatprep.subr.mxu0 %v46_v14  ;;  %1112 = vmatpush3.msra.mxu1 %v205_v39 }
  0x15   :  { %1060 = vmatpush3.msra.mxu0 %v46_v14 }
  0x16   :  { %1061 = vmatprep.subr.mxu0 %v45_v16 }
  0x17   :  { %1062 = vmatpush3.msra.mxu0 %v45_v16 }
  0x18   :  { %1063 = vmatprep.subr.mxu0 %v44_v17 }
  0x19   :  { %1064 = vmatpush3.msra.mxu0 %v44_v17 }
  0x1a   :  { %1065 = vmatprep.subr.mxu0 %v43_v18 }
  0x1b   :  { %1066 = vmatpush3.msra.mxu0 %v43_v18  ;;  %v1409_v18 = vrot.slane %v1388_v43, %v215_v15 }
  0x1c   :  { %1067 = vmatprep.subr.mxu0 %v42_v19 }
  0x1d   :  { %1068 = vmatpush3.msra.mxu0 %v42_v19  ;;  %v429_v19 = vsub.s32 2, %v1382_v41 }
  0x1e   :  { %1069 = vmatprep.subr.mxu0 %v41_v20 }
  0x1f   :  { %1070 = vmatpush3.msra.mxu0 %v41_v20 }
  0x20   :  { %1071 = vmatprep.subr.mxu0 %v40_v21 }
  0x21   :  { %1072 = vmatpush3.msra.mxu0 %v40_v21 }
  0x22   :  { %1074 = vmatmul.mubr.f32.vlgmr.msra.gmra.mxu0 %v25_v22 }
  0x23   :  { %1076 = vmatprep.mubr.f32.mxu0 %v26_v23 }
  0x26   :  { %1077 = vmatmul.mubr.f32.gmra.mxu0 %v27_v24 }
  0x27   :  { %1079 = vmatprep.mubr.f32.mxu0 %v28_v25 }
  0x2a   :  { %1080 = vmatmul.mubr.f32.gmra.mxu0 %v29_v26  ;;  %v1416_v26 = vrot.slane %v1388_v43, %v429_v19 }
  0x2b   :  { %1082 = vmatprep.mubr.f32.mxu0 %v30_v27 }
  0x2e   :  { %1083 = vmatmul.mubr.f32.gmra.mxu0 %v31_v28 }
  0x2f   :  { %1085 = vmatprep.mubr.f32.mxu0 %v32_v29 }
  0x32   :  { %1086 = vmatmul.mubr.f32.gmra.mxu0 %v33_v30 }
  0x33   :  { %1088 = vmatprep.mubr.f32.mxu0 %v34_v31 }
  0x36   :  { %1089 = vmatmul.mubr.f32.gmra.mxu0 %v35_v32 }
  0x37   :  { %1091 = vmatprep.mubr.f32.mxu0 %v36_v33 }
  0x3a   :  { %1092 = vmatmul.mubr.f32.gmra.mxu0 %v37_v34 }
  0x3b   :  { %1094 = vmatprep.mubr.f32.mxu0 %v38_v35 }
  0x3e   :  { %1095 = vmatmul.mubr.f32.gmra.mxu0 %v39_v36 }
  0xe2   :  { %v1075_v45 = vpop.f32.mrf.mxu0 }
  0xe3   :  { %v132_v48 = vadd.f32 %v1075_v45, %v59_v44 }
  0xe4   :  { %v126_v46 = vpop.f32.mrf.mxu0 }
  0xe5   :  { %v127_v47 = vadd.f32 %v126_v46, %v59_v44 }
  0xe6   :  { %v1078_v49 = vpop.f32.mrf.mxu0 }
  0xe7   :  { %1113 = vmatprep.mubr.msk.f32.mxu1 %vm217_vm0, %v127_v47  ;;  %v142_v52 = vadd.f32 %v1078_v49, %v59_v44 }
  0xe8   :  { %v136_v50 = vpop.f32.mrf.mxu0  ;;  %1114 = vmatmul.mubr.msk.f32.vlgmr.msra.gmra.mxu1 %vm217_vm0, %v132_v48 }
  0xe9   :  { %v137_v51 = vadd.f32 %v136_v50, %v59_v44 }
  0xea   :  { %v1081_v53 = vpop.f32.mrf.mxu0 }
  0xeb   :  { %1116 = vmatprep.mubr.msk.f32.mxu1 %vm217_vm0, %v137_v51  ;;  %v152_v56 = vadd.f32 %v1081_v53, %v59_v44 }
  0xec   :  { %v146_v54 = vpop.f32.mrf.mxu0  ;;  %1117 = vmatmul.mubr.msk.f32.gmra.mxu1 %vm217_vm0, %v142_v52 }
  0xed   :  { %v147_v55 = vadd.f32 %v146_v54, %v59_v44 }
  0xee   :  { %v1084_v57 = vpop.f32.mrf.mxu0 }
  0xef   :  { %1119 = vmatprep.mubr.msk.f32.mxu1 %vm217_vm0, %v147_v55  ;;  %v162_v60 = vadd.f32 %v1084_v57, %v59_v44 }
  0xf0   :  { %v156_v58 = vpop.f32.mrf.mxu0  ;;  %1120 = vmatmul.mubr.msk.f32.gmra.mxu1 %vm217_vm0, %v152_v56 }
  0xf1   :  { %v157_v59 = vadd.f32 %v156_v58, %v59_v44 }
  0xf2   :  { %v1087_v61 = vpop.f32.mrf.mxu0 }
  0xf3   :  { %1122 = vmatprep.mubr.msk.f32.mxu1 %vm217_vm0, %v157_v59  ;;  %v172_v62 = vadd.f32 %v1087_v61, %v59_v44 }
  0xf4   :  { %v166_v63 = vpop.f32.mrf.mxu0  ;;  %1123 = vmatmul.mubr.msk.f32.gmra.mxu1 %vm217_vm0, %v162_v60 }
  0xf5   :  { %v167_v0 = vadd.f32 %v166_v63, %v59_v44 }
  0xf6   :  { %v1090_v1 = vpop.f32.mrf.mxu0 }
  0xf7   :  { %1125 = vmatprep.mubr.msk.f32.mxu1 %vm217_vm0, %v167_v0  ;;  %v182_v2 = vadd.f32 %v1090_v1, %v59_v44 }
  0xf8   :  { %v176_v3 = vpop.f32.mrf.mxu0  ;;  %1126 = vmatmul.mubr.msk.f32.gmra.mxu1 %vm217_vm0, %v172_v62 }
  0xf9   :  { %v177_v4 = vadd.f32 %v176_v3, %v59_v44 }
  0xfa   :  { %v1093_v5 = vpop.f32.mrf.mxu0 }
  0xfb   :  { %1128 = vmatprep.mubr.msk.f32.mxu1 %vm217_vm0, %v177_v4  ;;  %v192_v6 = vadd.f32 %v1093_v5, %v59_v44 }
  0xfc   :  { %v186_v7 = vpop.f32.mrf.mxu0  ;;  %1129 = vmatmul.mubr.msk.f32.gmra.mxu1 %vm217_vm0, %v182_v2 }
  0xfd   :  { %v187_v8 = vadd.f32 %v186_v7, %v59_v44 }
  0xfe   :  { %v1096_v9 = vpop.f32.mrf.mxu0 }
  0xff   :  { %1131 = vmatprep.mubr.msk.f32.mxu1 %vm217_vm0, %v187_v8  ;;  %v202_v10 = vadd.f32 %v1096_v9, %v59_v44 }
 0x100   :  { %v196_v11 = vpop.f32.mrf.mxu0  ;;  %1132 = vmatmul.mubr.msk.f32.gmra.mxu1 %vm217_vm0, %v192_v6 }
 0x101   :  { %v197_v12 = vadd.f32 %v196_v11, %v59_v44 }
 0x103   :  { %1134 = vmatprep.mubr.msk.f32.mxu1 %vm217_vm0, %v197_v12 }
 0x104   :  { %1135 = vmatmul.mubr.msk.f32.gmra.mxu1 %vm217_vm0, %v202_v10 }
 0x1a8   :  { %v1115_v13 = vpop.f32.mrf.mxu1 }
 0x1a9   :  { %v338_v44 = vadd.f32 %v1115_v13, %v1409_v18 }
 0x1aa   :  { %v332_v14 = vpop.f32.mrf.mxu1 }
 0x1ab   :  { %v333_v31 = vadd.f32 %v332_v14, %v1409_v18  ;;  %v412_v53 = vmax.f32 %v338_v44, 0.0  ;;  %v515_v44 = vld [vmem:[%s1678_s4 + $0x28] sm:$0xff] }
 0x1ac   :  { %v1118_v16 = vpop.f32.mrf.mxu1 }
 0x1ad   :  { %v348_v32 = vadd.f32 %v1118_v16, %v1409_v18  ;;  %v411_v45 = vmax.f32 %v333_v31, 0.0  ;;  %v432_v61 = vmul.f32 %v1416_v26, %v412_v53  ;;  %v512_v53 = vld [vmem:[%s1678_s4 + $0x10] sm:$0xff] }
 0x1ae   :  { %v342_v17 = vpop.f32.mrf.mxu1 }
 0x1af   :  { %v343_v22 = vadd.f32 %v342_v17, %v1409_v18  ;;  %v414_v46 = vmax.f32 %v348_v32, 0.0  ;;  %v431_v58 = vmul.f32 %v1416_v26, %v411_v45  ;;  %v451_v5 = vsel %vm447_vm1, %v432_v61, 0.0 }
 0x1b0   :  { %v1121_v20 = vpop.f32.mrf.mxu1 }
 0x1b1   :  { %v358_v21 = vadd.f32 %v1121_v20, %v1409_v18  ;;  %v413_v33 = vmax.f32 %v343_v22, 0.0  ;;  %v434_v57 = vmul.f32 %v1416_v26, %v414_v46  ;;  %v448_v0 = vsel %vm447_vm1, %v431_v58, 0.0  ;;  %v510_v58 = vld [vmem:[%s1678_s4] sm:$0xff] }
 0x1b2   :  { %v352_v23 = vpop.f32.mrf.mxu1 }
 0x1b3   :  { %v416_v24 = vmax.f32 %v358_v21, 0.0  ;;  %v353_v25 = vadd.f32 %v352_v23, %v1409_v18  ;;  %v433_v51 = vmul.f32 %v1416_v26, %v413_v33  ;;  %v457_v63 = vsel %vm447_vm1, %v434_v57, 0.0 }
 0x1b4   :  { %v1124_v27 = vpop.f32.mrf.mxu1 }
 0x1b5   :  { %v415_v28 = vmax.f32 %v353_v25, 0.0  ;;  %v368_v29 = vadd.f32 %v1124_v27, %v1409_v18  ;;  %v436_v30 = vmul.f32 %v1416_v26, %v416_v24  ;;  %v454_v56 = vsel %vm447_vm1, %v433_v51, 0.0 }
 0x1b6   :  { %v362_v34 = vpop.f32.mrf.mxu1 }
 0x1b7   :  { %v418_v35 = vmax.f32 %v368_v29, 0.0  ;;  %v363_v36 = vadd.f32 %v362_v34, %v1409_v18  ;;  %v463_v37 = vsel %vm447_vm1, %v436_v30, 0.0  ;;  %v435_v38 = vmul.f32 %v1416_v26, %v415_v28 }
 0x1b8   :  { %464 = vadd.xlane.f32.xlu1 %v463_v37  ;;  %v1127_v39 = vpop.f32.mrf.mxu1 }
 0x1b9   :  { %v417_v40 = vmax.f32 %v363_v36, 0.0  ;;  %v438_v42 = vmul.f32 %v1416_v26, %v418_v35  ;;  %v460_v49 = vsel %vm447_vm1, %v435_v38, 0.0  ;;  %v378_v14 = vadd.f32 %v1127_v39, %v1409_v18  ;;  %v496_v35 = vld [vmem:[%s1677_s5] sm:$0xff] }
 0x1ba   :  { %v372_v47 = vpop.f32.mrf.mxu1  ;;  %1153 = vmatprep.mubr.msk.f32.mxu1 %vm217_vm0, %v496_v35  ;;  %1190 = vmatprep.mubr.msk.f32.mxu0 %vm217_vm0, %v496_v35 }
 0x1bb   :  { %v469_v48 = vsel %vm447_vm1, %v438_v42, 0.0  ;;  %v437_v50 = vmul.f32 %v1416_v26, %v417_v40  ;;  %v373_v20 = vadd.f32 %v372_v47, %v1409_v18  ;;  %v420_v24 = vmax.f32 %v378_v14, 0.0  ;;  %v516_v42 = vld [vmem:[%s1678_s4 + $0x30] sm:$0xff]  ;;  %v514_v47 = vld [vmem:[%s1678_s4 + $0x20] sm:$0xff] }
 0x1bc   :  { %470 = vadd.xlane.f32.xlu0 %v469_v48  ;;  %v1130_v52 = vpop.f32.mrf.mxu1  ;;  %461 = vadd.xlane.f32.xlu1 %v460_v49 }
 0x1bd   :  { %v466_v55 = vsel %vm447_vm1, %v437_v50, 0.0  ;;  %v388_v6 = vadd.f32 %v1130_v52, %v1409_v18  ;;  %v419_v28 = vmax.f32 %v373_v20, 0.0  ;;  %v440_v31 = vmul.f32 %v1416_v26, %v420_v24  ;;  %v513_v50 = vld [vmem:[%s1678_s4 + $0x18] sm:$0xff]  ;;  %v502_v20 = vld [vmem:[%s1677_s5 + $0x30] sm:$0xff] }
 0x1be   :  { %v382_v54 = vpop.f32.mrf.mxu1  ;;  %v506_v24 = vld [vmem:[%s1677_s5 + $0x50] sm:$0xff] }
 0x1bf   :  { %v383_v10 = vadd.f32 %v382_v54, %v1409_v18  ;;  %v422_v15 = vmax.f32 %v388_v6, 0.0  ;;  %v439_v33 = vmul.f32 %v1416_v26, %v419_v28  ;;  %v475_v34 = vsel %vm447_vm1, %v440_v31, 0.0  ;;  %v509_v28 = vld [vmem:[%s1677_s5 + $0x68] sm:$0xff] }
 0x1c0   :  { %v1133_v59 = vpop.f32.mrf.mxu1  ;;  %467 = vadd.xlane.f32.xlu0 %v466_v55  ;;  %455 = vadd.xlane.f32.xlu1 %v454_v56  ;;  %v511_v55 = vld [vmem:[%s1678_s4 + $0x8] sm:$0xff] }
 0x1c1   :  { %v398_v62 = vadd.f32 %v1133_v59, %v1409_v18  ;;  %v421_v21 = vmax.f32 %v383_v10, 0.0  ;;  %v442_v27 = vmul.f32 %v1416_v26, %v422_v15  ;;  %v472_v36 = vsel %vm447_vm1, %v439_v33, 0.0  ;;  %v498_v15 = vld [vmem:[%s1677_s5 + $0x10] sm:$0xff] }
 0x1c2   :  { %v392_v60 = vpop.f32.mrf.mxu1 }
 0x1c3   :  { %v393_v2 = vadd.f32 %v392_v60, %v1409_v18  ;;  %v424_v7 = vmax.f32 %v398_v62, 0.0  ;;  %v441_v30 = vmul.f32 %v1416_v26, %v421_v21  ;;  %v503_v21 = vld [vmem:[%s1677_s5 + $0x38] sm:$0xff] }
 0x1c4   :  { %v1136_v1 = vpop.f32.mrf.mxu1  ;;  %458 = vadd.xlane.f32.xlu0 %v457_v63  ;;  %449 = vadd.xlane.f32.xlu1 %v448_v0 }
 0x1c5   :  { %v408_v3 = vadd.f32 %v1136_v1, %v1409_v18  ;;  %v423_v11 = vmax.f32 %v393_v2, 0.0  ;;  %v444_v19 = vmul.f32 %v1416_v26, %v424_v7  ;;  %v478_v32 = vsel %vm447_vm1, %v441_v30, 0.0  ;;  %v497_v2 = vld [vmem:[%s1677_s5 + $0x8] sm:$0xff] }
 0x1c6   :  { %v402_v4 = vpop.f32.mrf.mxu1 }
 0x1c7   :  { %v426_v8 = vmax.f32 %v408_v3, 0.0  ;;  %v403_v9 = vadd.f32 %v402_v4, %v1409_v18  ;;  %v443_v23 = vmul.f32 %v1416_v26, %v423_v11  ;;  %v487_v25 = vsel %vm447_vm1, %v444_v19, 0.0  ;;  %v501_v19 = vld [vmem:[%s1677_s5 + $0x28] sm:$0xff] }
 0x1c8   :  { %452 = vadd.xlane.f32.xlu0 %v451_v5  ;;  %v481_v18 = vsel %vm447_vm1, %v442_v27, 0.0  ;;  %v508_v27 = vld [vmem:[%s1677_s5 + $0x60] sm:$0xff] }
 0x1c9   :  { %v425_v12 = vmax.f32 %v403_v9, 0.0  ;;  %v446_v13 = vmul.f32 %v1416_v26, %v426_v8  ;;  %v484_v29 = vsel %vm447_vm1, %v443_v23, 0.0  ;;  %v505_v23 = vld [vmem:[%s1677_s5 + $0x48] sm:$0xff] }
 0x1cb   :  { %v493_v16 = vsel %vm447_vm1, %v446_v13, 0.0  ;;  %v445_v17 = vmul.f32 %v1416_v26, %v425_v12  ;;  %v517_v26 = vld [vmem:[%s1678_s4 + $0x38] sm:$0xff] }
 0x1cc   :  { %494 = vadd.xlane.f32.xlu0 %v493_v16  ;;  %v499_v16 = vld [vmem:[%s1677_s5 + $0x18] sm:$0xff] }
 0x1cd   :  { %v490_v22 = vsel %vm447_vm1, %v445_v17, 0.0  ;;  %v500_v17 = vld [vmem:[%s1677_s5 + $0x20] sm:$0xff] }
 0x1ce   :  { %491 = vadd.xlane.f32.xlu1 %v490_v22  ;;  %v504_v22 = vld [vmem:[%s1677_s5 + $0x40] sm:$0xff] }
 0x1d0   :  { %488 = vadd.xlane.f32.xlu0 %v487_v25  ;;  %v507_v25 = vld [vmem:[%s1677_s5 + $0x58] sm:$0xff] }
 0x1d2   :  { %485 = vadd.xlane.f32.xlu1 %v484_v29  ;;  %v528_v29 = vsub.s32 3, %v1382_v41 }
 0x1d4   :  { %482 = vadd.xlane.f32.xlu0 %v481_v18  ;;  %v1559_v30 = vrot.slane %v1388_v43, %v528_v29 }
 0x1d6   :  { %479 = vadd.xlane.f32.xlu1 %v478_v32 }
 0x1d8   :  { %476 = vadd.xlane.f32.xlu0 %v475_v34 }
 0x1da   :  { %473 = vadd.xlane.f32.xlu1 %v472_v36 }
 0x241   :  { %v465_v37 = vpop.xlane.xlu1 %464 }
 0x242   :  { %v523_v48 = vmul.f32 %v515_v44, %v465_v37 }
 0x245   :  { %v471_v38 = vpop.xlane.xlu0 %470  ;;  %v462_v40 = vpop.xlane.xlu1 %461 }
 0x246   :  { %v525_v39 = vmul.f32 %v517_v26, %v471_v38  ;;  %v522_v52 = vmul.f32 %v514_v47, %v462_v40 }
 0x248   :  { %1137 = vmatprep.subr.mxu1 %v525_v39 }
 0x249   :  { %1138 = vmatpush3.msra.mxu1 %v525_v39  ;;  %v468_v45 = vpop.xlane.xlu0 %467  ;;  %v456_v49 = vpop.xlane.xlu1 %455 }
 0x24a   :  { %v524_v46 = vmul.f32 %v516_v42, %v468_v45  ;;  %v520_v57 = vmul.f32 %v512_v53, %v456_v49 }
 0x24c   :  { %1139 = vmatprep.subr.mxu1 %v524_v46 }
 0x24d   :  { %1140 = vmatpush3.msra.mxu1 %v524_v46  ;;  %v459_v51 = vpop.xlane.xlu0 %458  ;;  %v450_v59 = vpop.xlane.xlu1 %449 }
 0x24e   :  { %1141 = vmatprep.subr.mxu1 %v523_v48  ;;  %v521_v54 = vmul.f32 %v513_v50, %v459_v51  ;;  %v518_v62 = vmul.f32 %v510_v58, %v450_v59 }
 0x24f   :  { %1142 = vmatpush3.msra.mxu1 %v523_v48 }
 0x250   :  { %1143 = vmatprep.subr.mxu1 %v522_v52 }
 0x251   :  { %v453_v56 = vpop.xlane.xlu0 %452  ;;  %1144 = vmatpush3.msra.mxu1 %v522_v52 }
 0x252   :  { %1145 = vmatprep.subr.mxu1 %v521_v54  ;;  %v519_v60 = vmul.f32 %v511_v55, %v453_v56 }
 0x253   :  { %1146 = vmatpush3.msra.mxu1 %v521_v54 }
 0x254   :  { %1147 = vmatprep.subr.mxu1 %v520_v57 }
 0x255   :  { %v495_v61 = vpop.xlane.xlu0 %494  ;;  %1148 = vmatpush3.msra.mxu1 %v520_v57 }
 0x256   :  { %v728_v63 = vmul.f32 %v517_v26, %v495_v61  ;;  %1149 = vmatprep.subr.mxu1 %v519_v60 }
 0x257   :  { %1150 = vmatpush3.msra.mxu1 %v519_v60  ;;  %v492_v0 = vpop.xlane.xlu1 %491 }
 0x258   :  { %v727_v1 = vmul.f32 %v516_v42, %v492_v0  ;;  %1151 = vmatprep.subr.mxu1 %v518_v62  ;;  %1174 = vmatprep.subr.mxu0 %v728_v63 }
 0x259   :  { %1175 = vmatpush3.msra.mxu0 %v728_v63  ;;  %v489_v3 = vpop.xlane.xlu0 %488  ;;  %1152 = vmatpush3.msra.mxu1 %v518_v62 }
 0x25a   :  { %v726_v4 = vmul.f32 %v515_v44, %v489_v3  ;;  %1211 = vmatprep.subr.mxu1 %v728_v63  ;;  %1176 = vmatprep.subr.mxu0 %v727_v1 }
 0x25b   :  { %1154 = vmatmul.mubr.msk.f32.vlgmr.msra.gmra.mxu1 %vm217_vm0, %v497_v2  ;;  %1177 = vmatpush3.msra.mxu0 %v727_v1  ;;  %v486_v5 = vpop.xlane.xlu1 %485 }
 0x25c   :  { %1219 = vmatpush3.msra.mxu1 %v728_v63  ;;  %v725_v6 = vmul.f32 %v514_v47, %v486_v5  ;;  %1178 = vmatprep.subr.mxu0 %v726_v4 }
 0x25d   :  { %1212 = vmatprep.subr.mxu1 %v727_v1  ;;  %v483_v7 = vpop.xlane.xlu0 %482  ;;  %1179 = vmatpush3.msra.mxu0 %v726_v4 }
 0x25e   :  { %v724_v8 = vmul.f32 %v513_v50, %v483_v7  ;;  %1220 = vmatpush3.msra.mxu1 %v727_v1  ;;  %1180 = vmatprep.subr.mxu0 %v725_v6 }
 0x25f   :  { %1213 = vmatprep.subr.mxu1 %v726_v4  ;;  %1181 = vmatpush3.msra.mxu0 %v725_v6  ;;  %v480_v9 = vpop.xlane.xlu1 %479 }
 0x260   :  { %1221 = vmatpush3.msra.mxu1 %v726_v4  ;;  %v723_v10 = vmul.f32 %v512_v53, %v480_v9  ;;  %1182 = vmatprep.subr.mxu0 %v724_v8 }
 0x261   :  { %1214 = vmatprep.subr.mxu1 %v725_v6  ;;  %v477_v11 = vpop.xlane.xlu0 %476  ;;  %1183 = vmatpush3.msra.mxu0 %v724_v8 }
 0x262   :  { %v722_v12 = vmul.f32 %v511_v55, %v477_v11  ;;  %1222 = vmatpush3.msra.mxu1 %v725_v6  ;;  %1184 = vmatprep.subr.mxu0 %v723_v10 }
 0x263   :  { %1215 = vmatprep.subr.mxu1 %v724_v8  ;;  %1185 = vmatpush3.msra.mxu0 %v723_v10  ;;  %v474_v13 = vpop.xlane.xlu1 %473 }
 0x264   :  { %1223 = vmatpush3.msra.mxu1 %v724_v8  ;;  %v721_v14 = vmul.f32 %v510_v58, %v474_v13  ;;  %1186 = vmatprep.subr.mxu0 %v722_v12 }
 0x265   :  { %1216 = vmatprep.subr.mxu1 %v723_v10  ;;  %1187 = vmatpush3.msra.mxu0 %v722_v12 }
 0x266   :  { %1224 = vmatpush3.msra.mxu1 %v723_v10  ;;  %1188 = vmatprep.subr.mxu0 %v721_v14 }
 0x267   :  { %1217 = vmatprep.subr.mxu1 %v722_v12  ;;  %1189 = vmatpush3.msra.mxu0 %v721_v14 }
 0x268   :  { %1225 = vmatpush3.msra.mxu1 %v722_v12  ;;  %1156 = vmatprep.mubr.msk.f32.mxu1 %vm217_vm0, %v498_v15 }
 0x269   :  { %1218 = vmatprep.subr.mxu1 %v721_v14  ;;  %1157 = vmatmul.mubr.msk.f32.gmra.mxu1 %vm217_vm0, %v499_v16 }
 0x26a   :  { %1226 = vmatpush3.msra.mxu1 %v721_v14  ;;  %1159 = vmatprep.mubr.msk.f32.mxu1 %vm217_vm0, %v500_v17 }
 0x26b   :  { %1191 = vmatmul.mubr.msk.f32.vlgmr.msra.gmra.mxu0 %vm217_vm0, %v497_v2 }
 0x26c   :  { %1193 = vmatprep.mubr.msk.f32.mxu0 %vm217_vm0, %v498_v15 }
 0x26d   :  { %1160 = vmatmul.mubr.msk.f32.gmra.mxu1 %vm217_vm0, %v501_v19 }
 0x26e   :  { %1162 = vmatprep.mubr.msk.f32.mxu1 %vm217_vm0, %v502_v20 }
 0x26f   :  { %1194 = vmatmul.mubr.msk.f32.gmra.mxu0 %vm217_vm0, %v499_v16 }
 0x270   :  { %1196 = vmatprep.mubr.msk.f32.mxu0 %vm217_vm0, %v500_v17 }
 0x271   :  { %1163 = vmatmul.mubr.msk.f32.gmra.mxu1 %vm217_vm0, %v503_v21 }
 0x272   :  { %1165 = vmatprep.mubr.msk.f32.mxu1 %vm217_vm0, %v504_v22 }
 0x273   :  { %1197 = vmatmul.mubr.msk.f32.gmra.mxu0 %vm217_vm0, %v501_v19 }
 0x274   :  { %1199 = vmatprep.mubr.msk.f32.mxu0 %vm217_vm0, %v502_v20 }
 0x275   :  { %1166 = vmatmul.mubr.msk.f32.gmra.mxu1 %vm217_vm0, %v505_v23 }
 0x276   :  { %1168 = vmatprep.mubr.msk.f32.mxu1 %vm217_vm0, %v506_v24 }
 0x277   :  { %1200 = vmatmul.mubr.msk.f32.gmra.mxu0 %vm217_vm0, %v503_v21 }
 0x278   :  { %1202 = vmatprep.mubr.msk.f32.mxu0 %vm217_vm0, %v504_v22 }
 0x279   :  { %1169 = vmatmul.mubr.msk.f32.gmra.mxu1 %vm217_vm0, %v507_v25 }
 0x27a   :  { %1171 = vmatprep.mubr.msk.f32.mxu1 %vm217_vm0, %v508_v27 }
 0x27b   :  { %1203 = vmatmul.mubr.msk.f32.gmra.mxu0 %vm217_vm0, %v505_v23 }
 0x27d   :  { %1172 = vmatmul.mubr.msk.f32.gmra.mxu1 %vm217_vm0, %v509_v28 }
 0x27e   :  { %1205 = vmatprep.mubr.msk.f32.mxu1 %vm217_vm0, %v506_v24 }
 0x281   :  { %1206 = vmatmul.mubr.msk.f32.vlgmr.msra.gmra.mxu1 %vm217_vm0, %v507_v25 }
 0x282   :  { %1208 = vmatprep.mubr.msk.f32.mxu1 %vm217_vm0, %v508_v27 }
 0x285   :  { %1209 = vmatmul.mubr.msk.f32.gmra.mxu1 %vm217_vm0, %v509_v28 }
 0x31b   :  { %v1155_v18 = vpop.f32.mrf.mxu1 }
 0x31c   :  { %v644_v31 = vadd.f32 %v1155_v18, %v1559_v30 }
 0x31d   :  { %v638_v32 = vpop.f32.mrf.mxu1 }
 0x31e   :  { %708 = vst [vmem:[%s1679_s6 + $0x8] sm:$0xff] %v644_v31  ;;  %v639_v33 = vadd.f32 %v638_v32, %v1559_v30 }
 0x320   :  { %707 = vst [vmem:[%s1679_s6] sm:$0xff] %v639_v33 }
 0x329   :  { %v1158_v34 = vpop.f32.mrf.mxu1 }
 0x32a   :  { %v654_v41 = vadd.f32 %v1158_v34, %v1559_v30 }
 0x32b   :  { %v648_v35 = vpop.f32.mrf.mxu1  ;;  %v1192_v43 = vpop.f32.mrf.mxu0 }
 0x32c   :  { %710 = vst [vmem:[%s1679_s6 + $0x18] sm:$0xff] %v654_v41  ;;  %v649_v36 = vadd.f32 %v648_v35, %v1559_v30  ;;  %v801_v37 = vadd.f32 %v1192_v43, %v1559_v30 }
 0x32d   :  { %v1161_v26 = vpop.f32.mrf.mxu1  ;;  %v795_v38 = vpop.f32.mrf.mxu0 }
 0x32e   :  { %709 = vst [vmem:[%s1679_s6 + $0x10] sm:$0xff] %v649_v36  ;;  %v664_v39 = vadd.f32 %v1161_v26, %v1559_v30  ;;  %928 = vst [vmem:[%s1679_s6 + $0x78] sm:$0xff] %v801_v37  ;;  %v796_v40 = vadd.f32 %v795_v38, %v1559_v30 }
 0x32f   :  { %v658_v42 = vpop.f32.mrf.mxu1  ;;  %v1195_v44 = vpop.f32.mrf.mxu0 }
 0x330   :  { %712 = vst [vmem:[%s1679_s6 + $0x28] sm:$0xff] %v664_v39  ;;  %v659_v45 = vadd.f32 %v658_v42, %v1559_v30  ;;  %927 = vst [vmem:[%s1679_s6 + $0x70] sm:$0xff] %v796_v40  ;;  %v811_v46 = vadd.f32 %v1195_v44, %v1559_v30 }
 0x331   :  { %v1164_v47 = vpop.f32.mrf.mxu1  ;;  %v805_v48 = vpop.f32.mrf.mxu0 }
 0x332   :  { %711 = vst [vmem:[%s1679_s6 + $0x20] sm:$0xff] %v659_v45  ;;  %v674_v49 = vadd.f32 %v1164_v47, %v1559_v30  ;;  %930 = vst [vmem:[%s1679_s6 + $0x88] sm:$0xff] %v811_v46  ;;  %v806_v50 = vadd.f32 %v805_v48, %v1559_v30 }
 0x333   :  { %v668_v51 = vpop.f32.mrf.mxu1  ;;  %v1198_v52 = vpop.f32.mrf.mxu0 }
 0x334   :  { %714 = vst [vmem:[%s1679_s6 + $0x38] sm:$0xff] %v674_v49  ;;  %v669_v53 = vadd.f32 %v668_v51, %v1559_v30  ;;  %929 = vst [vmem:[%s1679_s6 + $0x80] sm:$0xff] %v806_v50  ;;  %v821_v54 = vadd.f32 %v1198_v52, %v1559_v30 }
 0x335   :  { %v1167_v55 = vpop.f32.mrf.mxu1  ;;  %v815_v56 = vpop.f32.mrf.mxu0 }
 0x336   :  { %713 = vst [vmem:[%s1679_s6 + $0x30] sm:$0xff] %v669_v53  ;;  %v684_v57 = vadd.f32 %v1167_v55, %v1559_v30  ;;  %932 = vst [vmem:[%s1679_s6 + $0x98] sm:$0xff] %v821_v54  ;;  %v816_v58 = vadd.f32 %v815_v56, %v1559_v30 }
 0x337   :  { %v678_v59 = vpop.f32.mrf.mxu1  ;;  %v1201_v60 = vpop.f32.mrf.mxu0 }
 0x338   :  { %716 = vst [vmem:[%s1679_s6 + $0x48] sm:$0xff] %v684_v57  ;;  %v679_v61 = vadd.f32 %v678_v59, %v1559_v30  ;;  %931 = vst [vmem:[%s1679_s6 + $0x90] sm:$0xff] %v816_v58  ;;  %v831_v62 = vadd.f32 %v1201_v60, %v1559_v30 }
 0x339   :  { %v1170_v63 = vpop.f32.mrf.mxu1  ;;  %v825_v0 = vpop.f32.mrf.mxu0 }
 0x33a   :  { %715 = vst [vmem:[%s1679_s6 + $0x40] sm:$0xff] %v679_v61  ;;  %v694_v1 = vadd.f32 %v1170_v63, %v1559_v30  ;;  %934 = vst [vmem:[%s1679_s6 + $0xa8] sm:$0xff] %v831_v62  ;;  %v826_v2 = vadd.f32 %v825_v0, %v1559_v30 }
 0x33b   :  { %v688_v3 = vpop.f32.mrf.mxu1  ;;  %v1204_v4 = vpop.f32.mrf.mxu0 }
 0x33c   :  { %718 = vst [vmem:[%s1679_s6 + $0x58] sm:$0xff] %v694_v1  ;;  %v689_v5 = vadd.f32 %v688_v3, %v1559_v30  ;;  %933 = vst [vmem:[%s1679_s6 + $0xa0] sm:$0xff] %v826_v2  ;;  %v841_v6 = vadd.f32 %v1204_v4, %v1559_v30 }
 0x33d   :  { %v1173_v7 = vpop.f32.mrf.mxu1  ;;  %v835_v8 = vpop.f32.mrf.mxu0 }
 0x33e   :  { %717 = vst [vmem:[%s1679_s6 + $0x50] sm:$0xff] %v689_v5  ;;  %v704_v9 = vadd.f32 %v1173_v7, %v1559_v30  ;;  %936 = vst [vmem:[%s1679_s6 + $0xb8] sm:$0xff] %v841_v6  ;;  %v836_v10 = vadd.f32 %v835_v8, %v1559_v30 }
 0x33f   :  { %v698_v11 = vpop.f32.mrf.mxu1 }
 0x340   :  { %720 = vst [vmem:[%s1679_s6 + $0x68] sm:$0xff] %v704_v9  ;;  %v699_v12 = vadd.f32 %v698_v11, %v1559_v30  ;;  %935 = vst [vmem:[%s1679_s6 + $0xb0] sm:$0xff] %v836_v10 }
 0x341   :  { %v1207_v13 = vpop.f32.mrf.mxu1 }
 0x342   :  { %719 = vst [vmem:[%s1679_s6 + $0x60] sm:$0xff] %v699_v12  ;;  %v851_v14 = vadd.f32 %v1207_v13, %v1559_v30 }
 0x343   :  { %v845_v15 = vpop.f32.mrf.mxu1 }
 0x344   :  { %938 = vst [vmem:[%s1679_s6 + $0xc8] sm:$0xff] %v851_v14  ;;  %v846_v16 = vadd.f32 %v845_v15, %v1559_v30 }
 0x345   :  { %v1210_v17 = vpop.f32.mrf.mxu1 }
 0x346   :  { %937 = vst [vmem:[%s1679_s6 + $0xc0] sm:$0xff] %v846_v16  ;;  %v861_v19 = vadd.f32 %v1210_v17, %v1559_v30 }
 0x347   :  { %v855_v20 = vpop.f32.mrf.mxu1 }
 0x348   :  { %940 = vst [vmem:[%s1679_s6 + $0xd8] sm:$0xff] %v861_v19  ;;  %v856_v21 = vadd.f32 %v855_v20, %v1559_v30 }
 0x34a   :  { %939 = vst [vmem:[%s1679_s6 + $0xd0] sm:$0xff] %v856_v21 }

</bundles_post_ra>
